<compile_context>
chip_gen: v6e
topology: v6e:2x2x1
jax: 0.10.0
libtpu: 0.0.40
codegen_flags: <defaults>
</compile_context>

<pallas_src>
import jax
import jax.numpy as jnp
from jax.experimental import pallas as pl
from jax.experimental.pallas import tpu as pltpu


def xornet_kernel(x_ref, w1_ref, b1_ref, w2_ref, b2_ref, o_ref):
    # x_ref: (2, TB) -- features on sublanes, batch on lanes.
    x0 = x_ref[0:1, :]                        # (1, TB) feature 0 over the batch
    x1 = x_ref[1:2, :]                        # (1, TB) feature 1 over the batch
    w1 = w1_ref[...]                          # (10, 2)

    # fc1: K=2 -> VPU broadcast FMAs (outer-product style), not the MXU.
    h = w1[:, 0:1] * x0 + w1[:, 1:2] * x1 + b1_ref[...]      # (10, TB)

    # softmax over the 10 hidden features (torch F.softmax dim=1 == axis 0 here),
    # with the normalization folded into fc2:
    #   out = (sum_k e_k * w2_k) / (sum_k e_k) + b2
    m = jnp.max(h, axis=0, keepdims=True)                    # (1, TB)  XLU reduce
    e = jnp.exp(h - m)                                       # (10, TB) EUP
    denom = jnp.sum(e, axis=0, keepdims=True)                # (1, TB)  XLU reduce
    num = jnp.sum(e * w2_ref[...], axis=0, keepdims=True)    # (1, TB)  fc2 numerator

    o_ref[...] = num * pl.reciprocal(denom, approx=True) + b2_ref[0]   # (1, TB)


def xornet_forward(x, w1, b1, w2, b2, *, batch_tile=1024):
    """x: (B, 2) f32; w1: (10, 2); b1: (10,); w2: (1, 10); b2: (1,)  (torch layouts)."""
    B = x.shape[0]
    # Lane-friendly batch tile: multiple of 128, no bigger than needed.
    tb = min(batch_tile, pl.cdiv(B, 128) * 128)
    b_pad = pl.cdiv(B, tb) * tb

    x_t = x.T                                 # (2, B) -> batch on lanes
    if b_pad != B:
        x_t = jnp.pad(x_t, ((0, 0), (0, b_pad - B)))   # zero tail; sliced off below

    w1_ = w1                                  # (10, 2)
    b1_ = b1.reshape(10, 1)                   # (10, 1) broadcast along lanes
    w2_ = w2.reshape(10, 1)                   # (10, 1) == (1,10).T
    b2_ = b2                                  # (1,) -> SMEM scalar

    out = pl.pallas_call(
        xornet_kernel,
        out_shape=jax.ShapeDtypeStruct((1, b_pad), jnp.float32),
        grid_spec=pltpu.PrefetchScalarGridSpec(
            num_scalar_prefetch=0,
            grid=(b_pad // tb,),
            in_specs=[
                pl.BlockSpec((2, tb), lambda i: (0, i)),           # x tile (lane-dense)
                pl.BlockSpec((10, 2), lambda i: (0, 0)),           # w1 (resident)
                pl.BlockSpec((10, 1), lambda i: (0, 0)),           # b1 (resident)
                pl.BlockSpec((10, 1), lambda i: (0, 0)),           # w2 (resident)
                pl.BlockSpec(memory_space=pltpu.MemorySpace.SMEM), # b2 scalar
            ],
            out_specs=pl.BlockSpec((1, tb), lambda i: (0, i)),
        ),
        compiler_params=pltpu.CompilerParams(
            dimension_semantics=("parallel",)),
    )(x_t, w1_, b1_, w2_, b2_)

    return out[0, :B].reshape(B, 1)


def xornet_reference(x, w1, b1, w2, b2):
    h = x @ w1.T + b1
    s = jax.nn.softmax(h, axis=1)
    return s @ w2.T + b2


if __name__ == "__main__":
    key = jax.random.PRNGKey(0)
    kx, k1, k2, k3, k4 = jax.random.split(key, 5)

    B = 8  # small batch of 2-feature XOR-style inputs
    x = jax.random.normal(kx, (B, 2), dtype=jnp.float32)

    # Deterministic synthetic parameters (shapes match nn.Linear(2,10) / nn.Linear(10,1)).
    w1 = jax.random.uniform(k1, (10, 2), minval=-0.7, maxval=0.7, dtype=jnp.float32)
    b1 = jax.random.uniform(k2, (10,), minval=-0.7, maxval=0.7, dtype=jnp.float32)
    w2 = jax.random.uniform(k3, (1, 10), minval=-0.3, maxval=0.3, dtype=jnp.float32)
    b2 = jax.random.uniform(k4, (1,), minval=-0.3, maxval=0.3, dtype=jnp.float32)

    out = xornet_forward(x, w1, b1, w2, b2)
    out = jax.block_until_ready(out)

    ref = xornet_reference(x, w1, b1, w2, b2)
    assert out.shape == (B, 1), out.shape
    # Tolerance covers the EUP approximate reciprocal in the softmax denominator.
    assert jnp.allclose(out, ref, atol=1e-3, rtol=1e-3), (out, ref)

    print("KERNEL_OK")
</pallas_src>

<mosaic_0001>
module attributes {stable_mosaic.version = 11 : i64} {
  func.func @xornet_kernel(%arg0: i32, %arg1: memref<2x128xf32, #tpu.memory_space<vmem>>, %arg2: memref<10x2xf32, #tpu.memory_space<vmem>>, %arg3: memref<10x1xf32, #tpu.memory_space<vmem>>, %arg4: memref<10x1xf32, #tpu.memory_space<vmem>>, %arg5: memref<1xf32, #tpu.memory_space<smem>>, %arg6: memref<1x128xf32, #tpu.memory_space<vmem>>) attributes {dimension_semantics = [#tpu.dimension_semantics<parallel>], iteration_bounds = array<i64: 1>, scalar_prefetch = 0 : i64, scratch_operands = 0 : i64, tpu.core_type = #tpu.core_type<tc>, window_params = [{transform_indices = @transform_0, window_bounds = array<i64: 2, 128>}, {pipeline_mode = #tpu.pipeline_mode<synchronous>, transform_indices = @transform_1, window_bounds = array<i64: 10, 2>}, {pipeline_mode = #tpu.pipeline_mode<synchronous>, transform_indices = @transform_2, window_bounds = array<i64: 10, 1>}, {pipeline_mode = #tpu.pipeline_mode<synchronous>, transform_indices = @transform_3, window_bounds = array<i64: 10, 1>}, {transform_indices = @transform_4, window_bounds = array<i64: 1>}, {transform_indices = @transform_5, window_bounds = array<i64: 1, 128>}]} {
    %c0 = arith.constant 0 : index
    %c0_0 = arith.constant 0 : index
    %0 = vector.load %arg1[%c0, %c0_0] : memref<2x128xf32, #tpu.memory_space<vmem>>, vector<1x128xf32>
    %c1 = arith.constant 1 : index
    %c0_1 = arith.constant 0 : index
    %1 = vector.load %arg1[%c1, %c0_1] : memref<2x128xf32, #tpu.memory_space<vmem>>, vector<1x128xf32>
    %c0_2 = arith.constant 0 : index
    %c0_3 = arith.constant 0 : index
    %2 = vector.load %arg2[%c0_2, %c0_3] : memref<10x2xf32, #tpu.memory_space<vmem>>, vector<10x2xf32>
    %3 = vector.extract_strided_slice %2 {offsets = [0, 0], sizes = [10, 1], strides = [1, 1]} : vector<10x2xf32> to vector<10x1xf32>
    %4 = vector.broadcast %3 : vector<10x1xf32> to vector<10x128xf32>
    %5 = vector.broadcast %0 : vector<1x128xf32> to vector<10x128xf32>
    %6 = arith.mulf %4, %5 : vector<10x128xf32>
    %7 = vector.extract_strided_slice %2 {offsets = [0, 1], sizes = [10, 1], strides = [1, 1]} : vector<10x2xf32> to vector<10x1xf32>
    %8 = vector.broadcast %7 : vector<10x1xf32> to vector<10x128xf32>
    %9 = vector.broadcast %1 : vector<1x128xf32> to vector<10x128xf32>
    %10 = arith.mulf %8, %9 : vector<10x128xf32>
    %11 = arith.addf %6, %10 : vector<10x128xf32>
    %c0_4 = arith.constant 0 : index
    %c0_5 = arith.constant 0 : index
    %12 = vector.load %arg3[%c0_4, %c0_5] : memref<10x1xf32, #tpu.memory_space<vmem>>, vector<10x1xf32>
    %13 = vector.broadcast %12 : vector<10x1xf32> to vector<10x128xf32>
    %14 = arith.addf %11, %13 : vector<10x128xf32>
    %cst = arith.constant dense<0xFF800000> : vector<128xf32>
    %15 = vector.multi_reduction <maximumf>, %14, %cst [0] : vector<10x128xf32> to vector<128xf32>
    %16 = vector.shape_cast %15 : vector<128xf32> to vector<1x128xf32>
    %17 = vector.broadcast %16 : vector<1x128xf32> to vector<10x128xf32>
    %18 = arith.subf %14, %17 : vector<10x128xf32>
    %19 = math.exp %18 : vector<10x128xf32>
    %cst_6 = arith.constant dense<0.000000e+00> : vector<128xf32>
    %20 = vector.multi_reduction <add>, %19, %cst_6 [0] : vector<10x128xf32> to vector<128xf32>
    %21 = vector.shape_cast %20 : vector<128xf32> to vector<1x128xf32>
    %c0_7 = arith.constant 0 : index
    %c0_8 = arith.constant 0 : index
    %22 = vector.load %arg4[%c0_7, %c0_8] : memref<10x1xf32, #tpu.memory_space<vmem>>, vector<10x1xf32>
    %23 = vector.broadcast %22 : vector<10x1xf32> to vector<10x128xf32>
    %24 = arith.mulf %19, %23 : vector<10x128xf32>
    %cst_9 = arith.constant dense<0.000000e+00> : vector<128xf32>
    %25 = vector.multi_reduction <add>, %24, %cst_9 [0] : vector<10x128xf32> to vector<128xf32>
    %26 = vector.shape_cast %25 : vector<128xf32> to vector<1x128xf32>
    %27 = tpu.reciprocal %21 {approx = true} : vector<1x128xf32> -> vector<1x128xf32>
    %28 = arith.mulf %26, %27 : vector<1x128xf32>
    %c0_10 = arith.constant 0 : index
    %29 = memref.load %arg5[%c0_10] : memref<1xf32, #tpu.memory_space<smem>>
    %30 = vector.broadcast %29 : f32 to vector<1x128xf32>
    %31 = arith.addf %28, %30 : vector<1x128xf32>
    %c0_11 = arith.constant 0 : index
    %c0_12 = arith.constant 0 : index
    %32 = vector.load %arg6[%c0_11, %c0_12] : memref<1x128xf32, #tpu.memory_space<vmem>>, vector<1x128xf32>
    tpu.vector_store %arg6[%c0_11, %c0_12], %31 {strides = array<i32>} : memref<1x128xf32, #tpu.memory_space<vmem>>, vector<1x128xf32>,
    return
  }
  func.func @transform_0(%arg0: i32) -> (i32, i32) {
    %c0_i32 = arith.constant 0 : i32
    %c0_i32_0 = arith.constant 0 : i32
    return %c0_i32, %arg0 : i32, i32
  }
  func.func @transform_1(%arg0: i32) -> (i32, i32) {
    %c0_i32 = arith.constant 0 : i32
    %c0_i32_0 = arith.constant 0 : i32
    %c0_i32_1 = arith.constant 0 : i32
    return %c0_i32, %c0_i32_0 : i32, i32
  }
  func.func @transform_2(%arg0: i32) -> (i32, i32) {
    %c0_i32 = arith.constant 0 : i32
    %c0_i32_0 = arith.constant 0 : i32
    %c0_i32_1 = arith.constant 0 : i32
    return %c0_i32, %c0_i32_0 : i32, i32
  }
  func.func @transform_3(%arg0: i32) -> (i32, i32) {
    %c0_i32 = arith.constant 0 : i32
    %c0_i32_0 = arith.constant 0 : i32
    %c0_i32_1 = arith.constant 0 : i32
    return %c0_i32, %c0_i32_0 : i32, i32
  }
  func.func @transform_4(%arg0: i32) -> i32 {
    %c0_i32 = arith.constant 0 : i32
    %c0_i32_0 = arith.constant 0 : i32
    return %c0_i32 : i32
  }
  func.func @transform_5(%arg0: i32) -> (i32, i32) {
    %c0_i32 = arith.constant 0 : i32
    %c0_i32_0 = arith.constant 0 : i32
    return %c0_i32, %arg0 : i32, i32
  }
}

</mosaic_0001>

<bundles_post_ra>
// kernel: tpu_custom_call.1
= control target key start
LH: loop header
LB: loop body
LE: loop exit
PB: predicated region body
PF: predicated region fallthrough
CT: control target
= control target key end

     0   :  { %v176_v2 = vmov 0   ;;  %s242_s0 = inlined_call_operand.vmem [shape: f32[2,128], index: 0, kind: input, shape index: {}]   ;;  %s243_s1 = inlined_call_operand.vmem [shape: f32[10,2], index: 1, kind: input, shape index: {}]   ;;  %s244_s2 = inlined_call_operand.vmem [shape: f32[10,1], index: 2, kind: input, shape index: {}]   ;;  %s245_s3 = inlined_call_operand.vmem [shape: f32[10,1], index: 3, kind: input, shape index: {}]   ;;  %s246_s4 = inlined_call_operand.<no memory space> [shape: f32[1], index: 4, kind: input, shape index: {}]   ;;  %s247_s5 = inlined_call_operand.hbm [shape: f32[1,128], index: 5, kind: output, shape index: {}]  }
   0x1   :  { %v25_v0 = vld [vmem:[%s243_s1 + $0x8] sm:$0x3]  ;;  %v24_v1 = vld [vmem:[%s243_s1] sm:$0xff]  ;;  %144 = vset.pattern.permute.xlu1 %v176_v2  ;;  %142 = vset.pattern.permute.xlu0 %v176_v2 }
   0x2   :  { %33 = vperm.xlu0 %142, %v25_v0   ;;  %28 = vperm.xlu1 %144, %v24_v1  }
   0x3   :  { %11 = vsyncpa [#allocation4], 0  ;;  %v177_v3 = vmov 1   ;;  %v58_v4 = vld [vmem:[%s244_s2] sm:$0xff]  ;;  %v59_v5 = vld [vmem:[%s244_s2 + $0x8] sm:$0x3]  ;;  %v120_v59 = vstv %s246_s4 }
   0x4   :  { %v96_v6 = vld [vmem:[%s245_s3 + $0x8] sm:$0x3]  ;;  %v95_v7 = vld [vmem:[%s245_s3] sm:$0xff]  ;;  %vm72_vm0 = vcmask 1041408   ;;  %s178_s7 = smov [#allocation3]  }
   0x5   :  { %v137_v10 = vld [vmem:[%s242_s0] ss:$0 sm:$0xff]  ;;  %v138_v11 = vld [vmem:[%s242_s0 + $0x1] ss:$0 sm:$0xff]  ;;  %s129_s8 = sshll.u32 %s178_s7, 4  ;;  %s130_s8 = int_to_ptr.vmem [resolvable:$true] %s129_s8 }
   0x6   :  { %143 = vset.pattern.permute.xlu0 %v177_v3  ;;  %145 = vset.pattern.permute.xlu1 %v177_v3  ;;  %s154_s9 = scalar_lea.vmem %s130_s8, 16  ;;  %s158_s10 = scalar_lea.vmem %s130_s8, 32 }
   0x7   :  { %47 = vperm.xlu0 %143, %v25_v0   ;;  %43 = vperm.xlu1 %145, %v24_v1   ;;  %p155_p0 = scmp.ne.s32.totalorder %s130_s8, %s154_s9  ;;  %p159_p1 = scmp.lt.s32.totalorder %s130_s8, %s130_s8 }
   0x8   :  { %p160_p2 = scmp.lt.s32.totalorder %s158_s10, %s154_s9 }
   0xa   :  { %p161_p3 = por %p160_p2, %p159_p1 }
   0xb   :  { %147 = vset.pattern.permute.xlu0 %v176_v2  ;;  %146 = vset.pattern.permute.xlu1 %v176_v2 }
   0xc   :  { %62 = vperm.xlu0 %147, %v58_v4   ;;  %67 = vperm.xlu1 %146, %v59_v5   ;;  %p162_p4 = pnand %p161_p3, %p155_p0 }
  0x10   :  { %104 = vperm.xlu1 %146, %v96_v6  }
  0x14   :  { %99 = vperm.xlu1 %146, %v95_v7  }
  0x7d   :  { %v29_v8 = vpop.permute.xlu1 %28  ;;  %v34_v9 = vpop.permute.xlu0 %33 }
  0x7e   :  { %v40_v14 = vmul.f32 %v137_v10, %v29_v8  ;;  %v41_v15 = vmul.f32 %v137_v10, %v34_v9 }
  0x82   :  { %v48_v12 = vpop.permute.xlu0 %47  ;;  %v44_v13 = vpop.permute.xlu1 %43 }
  0x83   :  { %v55_v16 = vmul.f32 %v138_v11, %v48_v12  ;;  %v54_v17 = vmul.f32 %v138_v11, %v44_v13 }
  0x85   :  { %v56_v18 = vadd.f32 %v54_v17, %v40_v14  ;;  %v57_v19 = vadd.f32 %v55_v16, %v41_v15 }
  0x87   :  { %v63_v20 = vpop.permute.xlu0 %62  ;;  %v68_v21 = vpop.permute.xlu1 %67 }
  0x88   :  { %v70_v22 = vadd.f32 %v63_v20, %v56_v18  ;;  %v71_v23 = vadd.f32 %v68_v21, %v57_v19 }
  0x8a   :  { %v73_v24 = vsel %vm72_vm0, %v71_v23, -inf }
  0x8b   :  { %v74_v25 = vmax.f32 %v70_v22, %v73_v24  ;;  %v105_v36 = vpop.permute.xlu1 %104 }
  0x8d   :  { %v75_v26 = vrot.slane %v74_v25, 4 }
  0x8f   :  { %v76_v27 = vmax.f32 %v74_v25, %v75_v26  ;;  %v100_v38 = vpop.permute.xlu1 %99 }
  0x91   :  { %v77_v28 = vrot.slane %v76_v27, 2 }
  0x93   :  { %v78_v29 = vmax.f32 %v76_v27, %v77_v28 }
  0x95   :  { %v79_v30 = vrot.slane %v78_v29, 1 }
  0x97   :  { %v80_v31 = vmax.f32 %v78_v29, %v79_v30 }
  0x99   :  { %v81_v32 = vsub.f32 %v70_v22, %v80_v31  ;;  %v82_v33 = vsub.f32 %v71_v23, %v80_v31 }
  0x9b   :  { %v83_v34 = vmul.f32 1.442695, %v81_v32  ;;  %v85_v35 = vmul.f32 1.442695, %v82_v33 }
  0x9d   :  { %148 = vpow2.f32 %v83_v34 }
  0x9e   :  { %150 = vpow2.f32 %v85_v35 }
  0xaa   :  { %v149_v37 = vpop.eup %148 }
  0xab   :  { %v151_v39 = vpop.eup %150  ;;  %v107_v40 = vmul.f32 %v149_v37, %v100_v38 }
  0xac   :  { %v87_v41 = vsel %vm72_vm0, %v151_v39, 0.0  ;;  %v108_v42 = vmul.f32 %v151_v39, %v105_v36 }
  0xad   :  { %v88_v43 = vadd.f32 %v149_v37, %v87_v41 }
  0xae   :  { %v109_v44 = vsel %vm72_vm0, %v108_v42, 0.0 }
  0xaf   :  { %v89_v45 = vrot.slane %v88_v43, 4  ;;  %v110_v46 = vadd.f32 %v109_v44, %v107_v40 }
  0xb1   :  { %v90_v47 = vadd.f32 %v89_v45, %v88_v43  ;;  %v111_v49 = vrot.slane %v110_v46, 4 }
  0xb3   :  { %v91_v48 = vrot.slane %v90_v47, 2  ;;  %v112_v52 = vadd.f32 %v111_v49, %v110_v46 }
  0xb5   :  { %v92_v50 = vadd.f32 %v91_v48, %v90_v47  ;;  %v113_v54 = vrot.slane %v112_v52, 2 }
  0xb7   :  { %v93_v51 = vrot.slane %v92_v50, 1  ;;  %v114_v55 = vadd.f32 %v113_v54, %v112_v52 }
  0xb9   :  { %v94_v53 = vadd.f32 %v93_v51, %v92_v50  ;;  %v115_v56 = vrot.slane %v114_v55, 1 }
  0xbb   :  { %152 = vrcp.f32 %v94_v53  ;;  %v116_v57 = vadd.f32 %v115_v56, %v114_v55 }
  0xc8   :  { %v153_v58 = vpop.eup %152 }
  0xc9   :  { %v118_v60 = vmul.f32 %v153_v58, %v116_v57 }
  0xcb   :  { %v121_v61 = vadd.f32 %v120_v59, %v118_v60 }
  0xcd   :  { %122 = vst [vmem:[#allocation3] sm:$0x1] %v121_v61 }
  0xce   :  { %165 = shalt.err (!%p162_p4)
}
  0xcf   :  { %132 = dma.vmem_to_hbm [thread:$0]  %s130_s8, 16, %s247_s5, [#allocation4]  }
  0xd0   :  { %174 = dma.done.wait [#allocation4], 16  }
  0xd1   :  { %175 = vsyncadd [#allocation4], 4294967280 }
  0xd2   :  { %136 = vsyncpa [#allocation4], 1 }

</bundles_post_ra>
